<compile_context>
chip_gen: v7x
topology: tpu7x:2x2x1
jax: 0.10.0
libtpu: 0.0.40
codegen_flags: <defaults>
</compile_context>

<pallas_src>
import math

import jax
import jax.numpy as jnp
from jax import lax
from jax.experimental import pallas as pl
from jax.experimental.pallas import tpu as pltpu


HIDDEN = (100, 50, 25)


def _round_up(x, m):
    return ((x + m - 1) // m) * m


def policy_net_kernel(obs_ref,
                      w1_ref, b1_ref,
                      w2_ref, b2_ref,
                      w3_ref, b3_ref,
                      w4_ref, b4_ref,
                      mu_ref):
    # obs_ref: (TB, ob_dim) f32, natural layout.  Cast to bf16 for the MXU only.
    # w*_ref : (out_pad, in_pad) bf16 (torch-native orientation, sublane-padded).
    # b*_ref : (out_pad, 1) f32.
    x = obs_ref[...].astype(jnp.bfloat16)

    # Layer 1: contract on the last axis of both operands (W @ obs^T) so obs
    # never needs a wrapper-side HBM transpose; result is (h1_pad, TB).
    dn = (((1,), (1,)), ((), ()))
    h = lax.dot_general(w1_ref[...], x, dn, preferred_element_type=jnp.float32)
    h = jnp.tanh(h + b1_ref[...])                      # f32 VPU/EUP (v5e-safe)
    h = h.astype(jnp.bfloat16)

    h = jnp.dot(w2_ref[...], h, preferred_element_type=jnp.float32)
    h = jnp.tanh(h + b2_ref[...]).astype(jnp.bfloat16)

    h = jnp.dot(w3_ref[...], h, preferred_element_type=jnp.float32)
    h = jnp.tanh(h + b3_ref[...]).astype(jnp.bfloat16)

    mu = jnp.dot(w4_ref[...], h, preferred_element_type=jnp.float32) + b4_ref[...]
    mu_ref[...] = mu.astype(mu_ref.dtype)              # (ac_pad, TB) lane-dense


def _prepare_params(params):
    """Pad layer out-dims to sublane multiples and cast MXU operands to bf16.

    ~30 KB of one-time work; padded rows are zero and the corresponding
    next-layer columns are zero, so real outputs are bit-identical in exact
    arithmetic.  Biases stay f32 for the VPU add.
    """
    h1, h2, h3 = HIDDEN
    ob_dim = params["w1"].shape[1]
    ac_dim = params["w4"].shape[0]
    h1p, h2p, h3p, acp = (_round_up(d, 8) for d in (h1, h2, h3, ac_dim))

    def pad2(a, rows, cols):
        r, c = a.shape
        return jnp.pad(a, ((0, rows - r), (0, cols - c)))

    pp = {
        "w1": pad2(params["w1"], h1p, ob_dim).astype(jnp.bfloat16),
        "b1": pad2(params["b1"], h1p, 1).astype(jnp.float32),
        "w2": pad2(params["w2"], h2p, h1p).astype(jnp.bfloat16),
        "b2": pad2(params["b2"], h2p, 1).astype(jnp.float32),
        "w3": pad2(params["w3"], h3p, h2p).astype(jnp.bfloat16),
        "b3": pad2(params["b3"], h3p, 1).astype(jnp.float32),
        "w4": pad2(params["w4"], acp, h3p).astype(jnp.bfloat16),
        "b4": pad2(params["b4"], acp, 1).astype(jnp.float32),
    }
    return pp, acp


def policy_net_forward(obs, params, *, block_batch=2048):
    """Returns (mu, std) matching Policy_Net.forward semantics.

    obs:    (B, ob_dim) float32
    params: dict with w1..w4 (out, in), b1..b4 (out, 1), log_std (1, ac_dim)
    """
    B, ob_dim = obs.shape
    ac_dim = params["w4"].shape[0]
    pp, acp = _prepare_params(params)
    h1p, h2p, h3p = pp["w1"].shape[0], pp["w2"].shape[0], pp["w3"].shape[0]

    # Batch lane tile: multiple of 256 (full MXU width, unmasked lane stores),
    # capped at ceil(B/2) rounded up so the grid has >=2 steps when B > 256
    # (lets v7x shard the "parallel" axis across both TensorCores).
    bb = max(256, _round_up(int(block_batch), 256))
    TB = min(bb, _round_up(-(-B // 2), 256))
    grid = (pl.cdiv(B, TB),)

    def const_spec(shape):
        # Weights/biases: same block every grid step -> DMA'd once, VMEM-resident.
        return pl.BlockSpec(shape, lambda i: (0, 0))

    flops = 2 * (ob_dim * h1p + h1p * h2p + h2p * h3p + h3p * acp) * B
    transcendentals = (h1p + h2p + h3p) * B
    weight_bytes = (2 * (ob_dim * h1p + h1p * h2p + h2p * h3p + h3p * acp)
                    + 4 * (h1p + h2p + h3p + acp))
    bytes_accessed = 4 * (ob_dim + acp) * B + weight_bytes

    mu_t = pl.pallas_call(
        policy_net_kernel,
        out_shape=jax.ShapeDtypeStruct((acp, B), jnp.float32),
        grid_spec=pltpu.PrefetchScalarGridSpec(
            num_scalar_prefetch=0,
            grid=grid,
            in_specs=[
                pl.BlockSpec((TB, ob_dim), lambda i: (i, 0)),   # obs streams, natural layout
                const_spec(pp["w1"].shape), const_spec(pp["b1"].shape),
                const_spec(pp["w2"].shape), const_spec(pp["b2"].shape),
                const_spec(pp["w3"].shape), const_spec(pp["b3"].shape),
                const_spec(pp["w4"].shape), const_spec(pp["b4"].shape),
            ],
            out_specs=pl.BlockSpec((acp, TB), lambda i: (0, i)),
        ),
        compiler_params=pltpu.CompilerParams(
            dimension_semantics=("parallel",)),
        cost_estimate=pl.CostEstimate(
            flops=flops,
            transcendentals=transcendentals,
            bytes_accessed=bytes_accessed),
    )(
        obs,
        pp["w1"], pp["b1"],
        pp["w2"], pp["b2"],
        pp["w3"], pp["b3"],
        pp["w4"], pp["b4"],
    )

    mu = mu_t[:ac_dim, :].T                  # (B, ac_dim); tiny slice+transpose
    std = jnp.exp(params["log_std"])         # obs-independent; hoisted out of kernel
    return mu, std


def init_params(key, ob_dim, ac_dim):
    """Deterministic init mirroring torch.nn.Linear default (U(-1/sqrt(in), 1/sqrt(in)))."""
    dims = [(ob_dim, HIDDEN[0]), (HIDDEN[0], HIDDEN[1]),
            (HIDDEN[1], HIDDEN[2]), (HIDDEN[2], ac_dim)]
    params = {}
    for idx, (fan_in, fan_out) in enumerate(dims, start=1):
        key, kw, kb = jax.random.split(key, 3)
        bound = 1.0 / math.sqrt(fan_in)
        # torch-native (out_features, in_features) layout; kernel computes W @ x + b.
        params[f"w{idx}"] = jax.random.uniform(
            kw, (fan_out, fan_in), jnp.float32, -bound, bound)
        params[f"b{idx}"] = jax.random.uniform(
            kb, (fan_out, 1), jnp.float32, -bound, bound)
    params["log_std"] = jnp.zeros((1, ac_dim), jnp.float32)
    return params


def reference_forward(obs, params):
    x = jnp.tanh(obs @ params["w1"].T + params["b1"].T)
    x = jnp.tanh(x @ params["w2"].T + params["b2"].T)
    x = jnp.tanh(x @ params["w3"].T + params["b3"].T)
    mu = x @ params["w4"].T + params["b4"].T
    std = jnp.exp(params["log_std"])
    return mu, std


if __name__ == "__main__":
    ob_dim, ac_dim, batch = 16, 4, 8
    key = jax.random.PRNGKey(0)
    key, k_obs = jax.random.split(key)

    params = init_params(key, ob_dim, ac_dim)
    obs = jax.random.normal(k_obs, (batch, ob_dim), jnp.float32)

    mu, std = jax.jit(policy_net_forward)(obs, params)
    jax.block_until_ready((mu, std))

    mu_ref, std_ref = reference_forward(obs, params)
    assert mu.shape == (batch, ac_dim) and std.shape == (1, ac_dim)
    # bf16 MXU operands -> relaxed tolerance vs the f32 reference (intentional
    # precision trade-off per perf review).
    assert jnp.allclose(mu, mu_ref, atol=3e-2, rtol=3e-2)
    assert jnp.allclose(std, std_ref, atol=1e-6, rtol=1e-6)

    print("KERNEL_OK")
</pallas_src>

<mosaic_0001>
module attributes {stable_mosaic.version = 11 : i64} {
  func.func @policy_net_kernel(%arg0: i32, %arg1: memref<256x16xf32, #tpu.memory_space<vmem>>, %arg2: memref<104x16xbf16, #tpu.memory_space<vmem>>, %arg3: memref<104x1xf32, #tpu.memory_space<vmem>>, %arg4: memref<56x104xbf16, #tpu.memory_space<vmem>>, %arg5: memref<56x1xf32, #tpu.memory_space<vmem>>, %arg6: memref<32x56xbf16, #tpu.memory_space<vmem>>, %arg7: memref<32x1xf32, #tpu.memory_space<vmem>>, %arg8: memref<8x32xbf16, #tpu.memory_space<vmem>>, %arg9: memref<8x1xf32, #tpu.memory_space<vmem>>, %arg10: memref<8x256xf32, #tpu.memory_space<vmem>>) attributes {dimension_semantics = [#tpu.dimension_semantics<parallel>], iteration_bounds = array<i64: 1>, scalar_prefetch = 0 : i64, scratch_operands = 0 : i64, tpu.core_type = #tpu.core_type<tc>, window_params = [{transform_indices = @transform_0, window_bounds = array<i64: 256, 16>}, {pipeline_mode = #tpu.pipeline_mode<synchronous>, transform_indices = @transform_1, window_bounds = array<i64: 104, 16>}, {pipeline_mode = #tpu.pipeline_mode<synchronous>, transform_indices = @transform_2, window_bounds = array<i64: 104, 1>}, {pipeline_mode = #tpu.pipeline_mode<synchronous>, transform_indices = @transform_3, window_bounds = array<i64: 56, 104>}, {pipeline_mode = #tpu.pipeline_mode<synchronous>, transform_indices = @transform_4, window_bounds = array<i64: 56, 1>}, {pipeline_mode = #tpu.pipeline_mode<synchronous>, transform_indices = @transform_5, window_bounds = array<i64: 32, 56>}, {pipeline_mode = #tpu.pipeline_mode<synchronous>, transform_indices = @transform_6, window_bounds = array<i64: 32, 1>}, {pipeline_mode = #tpu.pipeline_mode<synchronous>, transform_indices = @transform_7, window_bounds = array<i64: 8, 32>}, {pipeline_mode = #tpu.pipeline_mode<synchronous>, transform_indices = @transform_8, window_bounds = array<i64: 8, 1>}, {transform_indices = @transform_9, window_bounds = array<i64: 8, 256>}]} {
    %c0 = arith.constant 0 : index
    %c0_0 = arith.constant 0 : index
    %0 = vector.load %arg1[%c0, %c0_0] : memref<256x16xf32, #tpu.memory_space<vmem>>, vector<256x16xf32>
    %1 = arith.truncf %0 : vector<256x16xf32> to vector<256x16xbf16>
    %c0_1 = arith.constant 0 : index
    %c0_2 = arith.constant 0 : index
    %2 = vector.load %arg2[%c0_1, %c0_2] : memref<104x16xbf16, #tpu.memory_space<vmem>>, vector<104x16xbf16>
    %cst = arith.constant dense<0.000000e+00> : vector<104x256xf32>
    %3 = tpu.matmul %2, %1, %cst {dimension_numbers = #tpu.dot_dimension_numbers<[1], [1], [0], [0], [0, 0, 1, 0], [], []>} : vector<104x16xbf16>, vector<256x16xbf16>, vector<104x256xf32> -> vector<104x256xf32>
    %c0_3 = arith.constant 0 : index
    %c0_4 = arith.constant 0 : index
    %4 = vector.load %arg3[%c0_3, %c0_4] : memref<104x1xf32, #tpu.memory_space<vmem>>, vector<104x1xf32>
    %5 = vector.broadcast %4 : vector<104x1xf32> to vector<104x256xf32>
    %6 = arith.addf %3, %5 : vector<104x256xf32>
    %7 = math.tanh %6 : vector<104x256xf32>
    %8 = arith.truncf %7 : vector<104x256xf32> to vector<104x256xbf16>
    %c0_5 = arith.constant 0 : index
    %c0_6 = arith.constant 0 : index
    %9 = vector.load %arg4[%c0_5, %c0_6] : memref<56x104xbf16, #tpu.memory_space<vmem>>, vector<56x104xbf16>
    %cst_7 = arith.constant dense<0.000000e+00> : vector<56x256xf32>
    %10 = tpu.matmul %9, %8, %cst_7 {dimension_numbers = #tpu.dot_dimension_numbers<[1], [0], [0], [1], [0, 0, 1, 1], [], []>} : vector<56x104xbf16>, vector<104x256xbf16>, vector<56x256xf32> -> vector<56x256xf32>
    %c0_8 = arith.constant 0 : index
    %c0_9 = arith.constant 0 : index
    %11 = vector.load %arg5[%c0_8, %c0_9] : memref<56x1xf32, #tpu.memory_space<vmem>>, vector<56x1xf32>
    %12 = vector.broadcast %11 : vector<56x1xf32> to vector<56x256xf32>
    %13 = arith.addf %10, %12 : vector<56x256xf32>
    %14 = math.tanh %13 : vector<56x256xf32>
    %15 = arith.truncf %14 : vector<56x256xf32> to vector<56x256xbf16>
    %c0_10 = arith.constant 0 : index
    %c0_11 = arith.constant 0 : index
    %16 = vector.load %arg6[%c0_10, %c0_11] : memref<32x56xbf16, #tpu.memory_space<vmem>>, vector<32x56xbf16>
    %cst_12 = arith.constant dense<0.000000e+00> : vector<32x256xf32>
    %17 = tpu.matmul %16, %15, %cst_12 {dimension_numbers = #tpu.dot_dimension_numbers<[1], [0], [0], [1], [0, 0, 1, 1], [], []>} : vector<32x56xbf16>, vector<56x256xbf16>, vector<32x256xf32> -> vector<32x256xf32>
    %c0_13 = arith.constant 0 : index
    %c0_14 = arith.constant 0 : index
    %18 = vector.load %arg7[%c0_13, %c0_14] : memref<32x1xf32, #tpu.memory_space<vmem>>, vector<32x1xf32>
    %19 = vector.broadcast %18 : vector<32x1xf32> to vector<32x256xf32>
    %20 = arith.addf %17, %19 : vector<32x256xf32>
    %21 = math.tanh %20 : vector<32x256xf32>
    %22 = arith.truncf %21 : vector<32x256xf32> to vector<32x256xbf16>
    %c0_15 = arith.constant 0 : index
    %c0_16 = arith.constant 0 : index
    %23 = vector.load %arg8[%c0_15, %c0_16] : memref<8x32xbf16, #tpu.memory_space<vmem>>, vector<8x32xbf16>
    %cst_17 = arith.constant dense<0.000000e+00> : vector<8x256xf32>
    %24 = tpu.matmul %23, %22, %cst_17 {dimension_numbers = #tpu.dot_dimension_numbers<[1], [0], [0], [1], [0, 0, 1, 1], [], []>} : vector<8x32xbf16>, vector<32x256xbf16>, vector<8x256xf32> -> vector<8x256xf32>
    %c0_18 = arith.constant 0 : index
    %c0_19 = arith.constant 0 : index
    %25 = vector.load %arg9[%c0_18, %c0_19] : memref<8x1xf32, #tpu.memory_space<vmem>>, vector<8x1xf32>
    %26 = vector.broadcast %25 : vector<8x1xf32> to vector<8x256xf32>
    %27 = arith.addf %24, %26 : vector<8x256xf32>
    %c0_20 = arith.constant 0 : index
    %c0_21 = arith.constant 0 : index
    %28 = vector.load %arg10[%c0_20, %c0_21] : memref<8x256xf32, #tpu.memory_space<vmem>>, vector<8x256xf32>
    tpu.vector_store %arg10[%c0_20, %c0_21], %27 {strides = array<i32>} : memref<8x256xf32, #tpu.memory_space<vmem>>, vector<8x256xf32>,
    return
  }
  func.func @transform_0(%arg0: i32) -> (i32, i32) {
    %c0_i32 = arith.constant 0 : i32
    %c0_i32_0 = arith.constant 0 : i32
    return %arg0, %c0_i32 : i32, i32
  }
  func.func @transform_1(%arg0: i32) -> (i32, i32) {
    %c0_i32 = arith.constant 0 : i32
    %c0_i32_0 = arith.constant 0 : i32
    %c0_i32_1 = arith.constant 0 : i32
    return %c0_i32, %c0_i32_0 : i32, i32
  }
  func.func @transform_2(%arg0: i32) -> (i32, i32) {
    %c0_i32 = arith.constant 0 : i32
    %c0_i32_0 = arith.constant 0 : i32
    %c0_i32_1 = arith.constant 0 : i32
    return %c0_i32, %c0_i32_0 : i32, i32
  }
  func.func @transform_3(%arg0: i32) -> (i32, i32) {
    %c0_i32 = arith.constant 0 : i32
    %c0_i32_0 = arith.constant 0 : i32
    %c0_i32_1 = arith.constant 0 : i32
    return %c0_i32, %c0_i32_0 : i32, i32
  }
  func.func @transform_4(%arg0: i32) -> (i32, i32) {
    %c0_i32 = arith.constant 0 : i32
    %c0_i32_0 = arith.constant 0 : i32
    %c0_i32_1 = arith.constant 0 : i32
    return %c0_i32, %c0_i32_0 : i32, i32
  }
  func.func @transform_5(%arg0: i32) -> (i32, i32) {
    %c0_i32 = arith.constant 0 : i32
    %c0_i32_0 = arith.constant 0 : i32
    %c0_i32_1 = arith.constant 0 : i32
    return %c0_i32, %c0_i32_0 : i32, i32
  }
  func.func @transform_6(%arg0: i32) -> (i32, i32) {
    %c0_i32 = arith.constant 0 : i32
    %c0_i32_0 = arith.constant 0 : i32
    %c0_i32_1 = arith.constant 0 : i32
    return %c0_i32, %c0_i32_0 : i32, i32
  }
  func.func @transform_7(%arg0: i32) -> (i32, i32) {
    %c0_i32 = arith.constant 0 : i32
    %c0_i32_0 = arith.constant 0 : i32
    %c0_i32_1 = arith.constant 0 : i32
    return %c0_i32, %c0_i32_0 : i32, i32
  }
  func.func @transform_8(%arg0: i32) -> (i32, i32) {
    %c0_i32 = arith.constant 0 : i32
    %c0_i32_0 = arith.constant 0 : i32
    %c0_i32_1 = arith.constant 0 : i32
    return %c0_i32, %c0_i32_0 : i32, i32
  }
  func.func @transform_9(%arg0: i32) -> (i32, i32) {
    %c0_i32 = arith.constant 0 : i32
    %c0_i32_0 = arith.constant 0 : i32
    return %c0_i32, %arg0 : i32, i32
  }
}

</mosaic_0001>

<bundles_post_ra>
// kernel: policy_net_forward.1
= control target key start
LH: loop header
LB: loop body
LE: loop exit
PB: predicated region body
PF: predicated region fallthrough
CT: control target
= control target key end

     0   :  { %vm205_vm0 = vcmask 130048   ;;  %v985_v7 = vmov 0   ;;  %vm496_vm1 = vcmask 1043456   ;;  %vm483_vm2 = vcmask 850944   ;;  %s1299_s0 = inlined_call_operand.vmem [shape: f32[8,16], index: 0, kind: input, shape index: {}]   ;;  %s1300_s1 = inlined_call_operand.vmem [shape: bf16[104,16], index: 1, kind: input, shape index: {}]   ;;  %s1301_s2 = inlined_call_operand.vmem [shape: f32[104,1], index: 2, kind: input, shape index: {}]   ;;  %s1302_s3 = inlined_call_operand.vmem [shape: bf16[56,104], index: 3, kind: input, shape index: {}]   ;;  %s1303_s4 = inlined_call_operand.vmem [shape: f32[56,1], index: 4, kind: input, shape index: {}]   ;;  %s1304_s5 = inlined_call_operand.vmem [shape: bf16[32,56], index: 5, kind: input, shape index: {}]   ;;  %s1305_s6 = inlined_call_operand.vmem [shape: f32[32,1], index: 6, kind: input, shape index: {}]   ;;  %s1306_s7 = inlined_call_operand.vmem [shape: bf16[8,32], index: 7, kind: input, shape index: {}]   ;;  %s1307_s8 = inlined_call_operand.vmem [shape: f32[8,1], index: 8, kind: input, shape index: {}]   ;;  %s1308_s9 = inlined_call_operand.vmem [shape: f32[8,8], index: 9, kind: output, shape index: {}]  }
   0x1   :  { %v49_v0 = vld [vmem:[%s1299_s0 + $0x80] sm:$0xff]  ;;  %v50_v1 = vld [vmem:[%s1299_s0 + $0x88] sm:$0xff]  ;;  %v51_v5 = vld [vmem:[%s1299_s0 + $0x90] sm:$0xff]  ;;  %874 = vset.pattern.permute.xlu0 %v985_v7  ;;  %875 = vset.pattern.permute.xlu1 %v985_v7  ;;  %vm634_vm3 = vcmask 457728   ;;  %vm719_vm4 = vcmask 261120  }
   0x2   :  { %v33_v2 = vld [vmem:[%s1299_s0] sm:$0xff]  ;;  %v73_v3 = vpack.c.bf16 %v50_v1, %v49_v0  ;;  %v34_v4 = vld [vmem:[%s1299_s0 + $0x8] sm:$0xff]  ;;  %v52_v6 = vld [vmem:[%s1299_s0 + $0x98] sm:$0xff]  ;;  %535 = vmatprep.mubr.bf16.mxu1 %v985_v7 }
   0x3   :  { %v65_v8 = vpack.c.bf16 %v34_v4, %v33_v2  ;;  %v74_v9 = vpack.c.bf16 %v52_v6, %v51_v5  ;;  %v35_v10 = vld [vmem:[%s1299_s0 + $0x10] sm:$0xff]  ;;  %v36_v11 = vld [vmem:[%s1299_s0 + $0x18] sm:$0xff]  ;;  %v53_v14 = vld [vmem:[%s1299_s0 + $0xa0] sm:$0xff] }
   0x4   :  { %865 = vmatprep.subr.msk.bf16.mxu0 %vm205_vm0, %v73_v3  ;;  %v66_v13 = vpack.c.bf16 %v36_v11, %v35_v10  ;;  %v54_v15 = vld [vmem:[%s1299_s0 + $0xa8] sm:$0xff]  ;;  %v37_v18 = vld [vmem:[%s1299_s0 + $0x20] sm:$0xff]  ;;  %v55_v22 = vld [vmem:[%s1299_s0 + $0xb0] sm:$0xff] }
   0x5   :  { %v228_v12 = vsel %vm205_vm0, %v65_v8, 0  ;;  %v75_v17 = vpack.c.bf16 %v54_v15, %v53_v14  ;;  %v38_v19 = vld [vmem:[%s1299_s0 + $0x28] sm:$0xff]  ;;  %v1082_v20 = vld [vmem:[%s1300_s1] sm:$0xff]   ;;  %v56_v23 = vld [vmem:[%s1299_s0 + $0xb8] sm:$0xff] }
   0x6   :  { %836 = vmatpush3.bf16.xpose.msra.mxu0 %v228_v12  ;;  %v231_v16 = vsel %vm205_vm0, %v66_v13, 0  ;;  %851 = vmatprep.mubr.msk.bf16.mxu0 %vm205_vm0, %v1082_v20  ;;  %v67_v21 = vpack.c.bf16 %v38_v19, %v37_v18  ;;  %v94_v24 = vld [vmem:[%s1301_s2] sm:$0xff]  ;;  %v76_v26 = vpack.c.bf16 %v56_v23, %v55_v22  ;;  %v39_v27 = vld [vmem:[%s1299_s0 + $0x30] sm:$0xff]  ;;  %v40_v28 = vld [vmem:[%s1299_s0 + $0x38] sm:$0xff] }
   0x7   :  { %866 = vmatprep.subr.msk.bf16.mxu0 %vm205_vm0, %v74_v9  ;;  %109 = vperm.xlu0 %874, %v94_v24   ;;  %v96_v29 = vld [vmem:[%s1301_s2 + $0x10] sm:$0xff]  ;;  %v95_v30 = vld [vmem:[%s1301_s2 + $0x8] sm:$0xff]  ;;  %v97_v31 = vld [vmem:[%s1301_s2 + $0x18] sm:$0xff]  ;;  %v68_v32 = vpack.c.bf16 %v40_v28, %v39_v27 }
   0x8   :  { %v234_v25 = vsel %vm205_vm0, %v67_v21, 0  ;;  %119 = vperm.xlu1 %875, %v96_v29   ;;  %v57_v33 = vld [vmem:[%s1299_s0 + $0xc0] sm:$0xff]  ;;  %v58_v34 = vld [vmem:[%s1299_s0 + $0xc8] sm:$0xff]  ;;  %v100_v40 = vld [vmem:[%s1301_s2 + $0x30] sm:$0xff] }
   0x9   :  { %v98_v35 = vld [vmem:[%s1301_s2 + $0x20] sm:$0xff]  ;;  %v99_v36 = vld [vmem:[%s1301_s2 + $0x28] sm:$0xff]  ;;  %v237_v37 = vsel %vm205_vm0, %v68_v32, 0  ;;  %v77_v41 = vpack.c.bf16 %v58_v34, %v57_v33  ;;  %v101_v42 = vld [vmem:[%s1301_s2 + $0x38] sm:$0xff] }
   0xa   :  { %v41_v38 = vld [vmem:[%s1299_s0 + $0x40] sm:$0xff]  ;;  %v42_v39 = vld [vmem:[%s1299_s0 + $0x48] sm:$0xff]  ;;  %v59_v44 = vld [vmem:[%s1299_s0 + $0xd0] sm:$0xff] }
   0xb   :  { %114 = vperm.xlu0 %874, %v95_v30   ;;  %v69_v43 = vpack.c.bf16 %v42_v39, %v41_v38  ;;  %v60_v45 = vld [vmem:[%s1299_s0 + $0xd8] sm:$0xff]  ;;  %v102_v46 = vld [vmem:[%s1301_s2 + $0x40] sm:$0xff]  ;;  %v103_v47 = vld [vmem:[%s1301_s2 + $0x48] sm:$0xff] }
   0xc   :  { %124 = vperm.xlu1 %875, %v97_v31   ;;  %v78_v49 = vpack.c.bf16 %v60_v45, %v59_v44  ;;  %v43_v50 = vld [vmem:[%s1299_s0 + $0x50] sm:$0xff]  ;;  %v44_v51 = vld [vmem:[%s1299_s0 + $0x58] sm:$0xff]  ;;  %v61_v55 = vld [vmem:[%s1299_s0 + $0xe0] sm:$0xff] }
   0xd   :  { %v240_v48 = vsel %vm205_vm0, %v69_v43, 0  ;;  %v104_v52 = vld [vmem:[%s1301_s2 + $0x50] sm:$0xff]  ;;  %v105_v53 = vld [vmem:[%s1301_s2 + $0x58] sm:$0xff]  ;;  %v70_v54 = vpack.c.bf16 %v44_v51, %v43_v50  ;;  %v62_v56 = vld [vmem:[%s1299_s0 + $0xe8] sm:$0xff] }
   0xe   :  { %838 = vmatpush3.bf16.xpose.msra.mxu0 %v231_v16  ;;  %v106_v57 = vld [vmem:[%s1301_s2 + $0x60] sm:$0xff]  ;;  %v79_v60 = vpack.c.bf16 %v62_v56, %v61_v55  ;;  %v46_v62 = vld [vmem:[%s1299_s0 + $0x68] sm:$0xff]  ;;  %v425_v0 = vld [vmem:[%s1303_s4 + $0x10] sm:$0xff] }
   0xf   :  { %867 = vmatprep.subr.msk.bf16.mxu0 %vm205_vm0, %v75_v17  ;;  %129 = vperm.xlu0 %874, %v98_v35   ;;  %v423_v58 = vld [vmem:[%s1303_s4] sm:$0xff]  ;;  %v243_v59 = vsel %vm205_vm0, %v70_v54, 0  ;;  %v424_v63 = vld [vmem:[%s1303_s4 + $0x8] sm:$0xff]  ;;  %v63_v2 = vld [vmem:[%s1299_s0 + $0xf0] sm:$0xff] }
  0x10   :  { %134 = vperm.xlu1 %875, %v99_v36   ;;  %v45_v61 = vld [vmem:[%s1299_s0 + $0x60] sm:$0xff]  ;;  %v64_v3 = vld [vmem:[%s1299_s0 + $0xf8] sm:$0xff]  ;;  %v47_v9 = vld [vmem:[%s1299_s0 + $0x70] sm:$0xff] }
  0x11   :  { %v71_v1 = vpack.c.bf16 %v46_v62, %v45_v61  ;;  %v426_v4 = vld [vmem:[%s1303_s4 + $0x18] sm:$0xff]  ;;  %v427_v5 = vld [vmem:[%s1303_s4 + $0x20] sm:$0xff]  ;;  %v80_v8 = vpack.c.bf16 %v64_v3, %v63_v2  ;;  %v428_v11 = vld [vmem:[%s1303_s4 + $0x28] sm:$0xff] }
  0x12   :  { %v48_v10 = vld [vmem:[%s1299_s0 + $0x78] sm:$0xff]  ;;  %v429_v12 = vld [vmem:[%s1303_s4 + $0x30] sm:$0xff]  ;;  %v600_v14 = vld [vmem:[%s1305_s6] sm:$0xff] }
  0x13   :  { %139 = vperm.xlu0 %874, %v100_v40   ;;  %v246_v6 = vsel %vm205_vm0, %v71_v1, 0  ;;  %v72_v13 = vpack.c.bf16 %v48_v10, %v47_v9  ;;  %v601_v15 = vld [vmem:[%s1305_s6 + $0x8] sm:$0xff]  ;;  %v602_v17 = vld [vmem:[%s1305_s6 + $0x10] sm:$0xff]  ;;  %v603_v18 = vld [vmem:[%s1305_s6 + $0x18] sm:$0xff] }
  0x14   :  { %144 = vperm.xlu1 %875, %v101_v42   ;;  %v713_v19 = vld [vmem:[%s1307_s8] sm:$0xff]  ;;  %v877_v21 = vld [vmem:[%s1300_s1 + $0x8] sm:$0xff]   ;;  %v878_v22 = vld [vmem:[%s1300_s1 + $0x10] sm:$0xff]  }
  0x15   :  { %v249_v16 = vsel %vm205_vm0, %v72_v13, 0  ;;  %v879_v23 = vld [vmem:[%s1300_s1 + $0x18] sm:$0xff]   ;;  %v881_v24 = vld [vmem:[%s1300_s1 + $0x28] sm:$0xff]  }
  0x16   :  { %840 = vmatpush3.bf16.xpose.msra.mxu0 %v234_v25  ;;  %v882_v25 = vld [vmem:[%s1300_s1 + $0x30] ss:$0 sps:$4 sm:$0xff]  }
  0x17   :  { %868 = vmatprep.subr.msk.bf16.mxu0 %vm205_vm0, %v76_v26  ;;  %149 = vperm.xlu0 %874, %v102_v46  }
  0x18   :  { %154 = vperm.xlu1 %875, %v103_v47  }
  0x1b   :  { %159 = vperm.xlu0 %874, %v104_v52  }
  0x1c   :  { %164 = vperm.xlu1 %875, %v105_v53  }
  0x1e   :  { %842 = vmatpush3.bf16.xpose.msra.mxu0 %v237_v37 }
  0x1f   :  { %869 = vmatprep.subr.msk.bf16.mxu0 %vm205_vm0, %v77_v41  ;;  %169 = vperm.xlu0 %874, %v106_v57  }
  0x20   :  { %432 = vperm.xlu1 %875, %v423_v58  }
  0x23   :  { %437 = vperm.xlu0 %874, %v424_v63  }
  0x24   :  { %442 = vperm.xlu1 %875, %v425_v0  }
  0x26   :  { %844 = vmatpush3.bf16.xpose.msra.mxu0 %v240_v48 }
  0x27   :  { %870 = vmatprep.subr.msk.bf16.mxu0 %vm205_vm0, %v78_v49  ;;  %447 = vperm.xlu0 %874, %v426_v4  }
  0x28   :  { %452 = vperm.xlu1 %875, %v427_v5  }
  0x2b   :  { %457 = vperm.xlu0 %874, %v428_v11  }
  0x2c   :  { %462 = vperm.xlu1 %875, %v429_v12  }
  0x2e   :  { %846 = vmatpush3.bf16.xpose.msra.mxu0 %v243_v59 }
  0x2f   :  { %871 = vmatprep.subr.msk.bf16.mxu0 %vm205_vm0, %v79_v60  ;;  %606 = vperm.xlu0 %874, %v600_v14  }
  0x30   :  { %611 = vperm.xlu1 %875, %v601_v15  }
  0x33   :  { %616 = vperm.xlu0 %874, %v602_v17  }
  0x34   :  { %621 = vperm.xlu1 %875, %v603_v18  }
  0x36   :  { %848 = vmatpush3.bf16.xpose.msra.mxu0 %v246_v6 }
  0x37   :  { %872 = vmatprep.subr.msk.bf16.mxu0 %vm205_vm0, %v80_v8  ;;  %716 = vperm.xlu0 %874, %v713_v19  }
  0x3e   :  { %850 = vmatpush3.bf16.xpose.msra.mxu0 %v249_v16 }
  0x45   :  { %852 = vmatmul.mubr.msk.bf16.vlgmr.msra.gmra.mrb[0].mxu0 %vm205_vm0, %v1082_v20  ;;  %v880_v20 = vld [vmem:[%s1300_s1 + $0x20] sm:$0xff]  }
  0x46   :  { %853 = vmatprep.mubr.msk.bf16.mxu0 %vm205_vm0, %v877_v21 }
  0x4d   :  { %854 = vmatmul.mubr.msk.bf16.gmra.mrb[4].mxu0 %vm205_vm0, %v877_v21 }
  0x4e   :  { %855 = vmatprep.mubr.msk.bf16.mxu0 %vm205_vm0, %v878_v22 }
  0x55   :  { %856 = vmatmul.mubr.msk.bf16.gmra.mrb[8].mxu0 %vm205_vm0, %v878_v22 }
  0x56   :  { %857 = vmatprep.mubr.msk.bf16.mxu0 %vm205_vm0, %v879_v23 }
  0x5d   :  { %858 = vmatmul.mubr.msk.bf16.gmra.mrb[12].mxu0 %vm205_vm0, %v879_v23 }
  0x5e   :  { %859 = vmatprep.mubr.msk.bf16.mxu0 %vm205_vm0, %v880_v20 }
  0x65   :  { %860 = vmatmul.mubr.msk.bf16.gmra.mrb[16].mxu0 %vm205_vm0, %v880_v20 }
  0x66   :  { %861 = vmatprep.mubr.msk.bf16.mxu0 %vm205_vm0, %v881_v24 }
  0x6d   :  { %862 = vmatmul.mubr.msk.bf16.gmra.mrb[20].mxu0 %vm205_vm0, %v881_v24 }
  0x6e   :  { %863 = vmatprep.mubr.msk.bf16.mxu0 %vm205_vm0, %v882_v25 }
  0x75   :  { %864 = vmatmul.mubr.msk.bf16.gmra.mrb[24].mxu0 %vm205_vm0, %v882_v25 }
  0x86   :  { %v110_v26 = vpop.permute.xlu0 %109 }
  0x87   :  { %v120_v35 = vpop.permute.xlu1 %119 }
  0x8a   :  { %v115_v30 = vpop.permute.xlu0 %114 }
  0x8b   :  { %v125_v40 = vpop.permute.xlu1 %124 }
  0x8e   :  { %v130_v50 = vpop.permute.xlu0 %129 }
  0x8f   :  { %v135_v56 = vpop.permute.xlu1 %134 }
  0x92   :  { %v140_v2 = vpop.permute.xlu0 %139 }
  0x93   :  { %v145_v9 = vpop.permute.xlu1 %144 }
  0x96   :  { %v150_v19 = vpop.permute.xlu0 %149 }
  0x97   :  { %v155_v25 = vpop.permute.xlu1 %154 }
 0x118   :  { %v309_v27 = vpop.f32.mrb[0].mxu0 }
 0x119   :  { %v310_v28 = vadd.f32 %v309_v27, %v110_v26  ;;  %v311_v29 = vpop.f32.mrb[1].mxu0 }
 0x11a   :  { %v312_v31 = vadd.f32 %v311_v29, %v110_v26  ;;  %v313_v32 = vpop.f32.mrb[2].mxu0 }
 0x11b   :  { %889 = vtanh.f32 %v310_v28  ;;  %v314_v33 = vadd.f32 %v313_v32, %v115_v30  ;;  %v315_v34 = vpop.f32.mrb[3].mxu0 }
 0x11c   :  { %891 = vtanh.f32 %v312_v31  ;;  %v316_v36 = vadd.f32 %v315_v34, %v115_v30 }
 0x11d   :  { %893 = vtanh.f32 %v314_v33 }
 0x11e   :  { %895 = vtanh.f32 %v316_v36 }
 0x120   :  { %v319_v37 = vpop.f32.mrb[4].mxu0 }
 0x121   :  { %v320_v38 = vadd.f32 %v319_v37, %v120_v35  ;;  %v321_v39 = vpop.f32.mrb[5].mxu0 }
 0x122   :  { %v322_v41 = vadd.f32 %v321_v39, %v120_v35  ;;  %v323_v42 = vpop.f32.mrb[6].mxu0  ;;  %v160_v35 = vpop.permute.xlu0 %159 }
 0x123   :  { %897 = vtanh.f32 %v320_v38  ;;  %v324_v43 = vadd.f32 %v323_v42, %v125_v40  ;;  %v325_v44 = vpop.f32.mrb[7].mxu0 }
 0x124   :  { %899 = vtanh.f32 %v322_v41  ;;  %v326_v45 = vadd.f32 %v325_v44, %v125_v40  ;;  %v165_v41 = vpop.permute.xlu1 %164 }
 0x125   :  { %v890_v46 = vpop.eup %889  ;;  %901 = vtanh.f32 %v324_v43 }
 0x126   :  { %v892_v47 = vpop.eup %891  ;;  %903 = vtanh.f32 %v326_v45 }
 0x127   :  { %v894_v48 = vpop.eup %893 }
 0x128   :  { %v896_v49 = vpop.eup %895  ;;  %v329_v51 = vpop.f32.mrb[8].mxu0  ;;  %v402_v52 = vpack.c.bf16 %v894_v48, %v890_v46 }
 0x129   :  { %v330_v53 = vadd.f32 %v329_v51, %v130_v50  ;;  %v331_v54 = vpop.f32.mrb[9].mxu0  ;;  %v403_v55 = vpack.c.bf16 %v896_v49, %v892_v47  ;;  %v170_v51 = vpop.permute.xlu0 %169 }
 0x12a   :  { %v332_v57 = vadd.f32 %v331_v54, %v130_v50  ;;  %v333_v58 = vpop.f32.mrb[10].mxu0 }
 0x12b   :  { %905 = vtanh.f32 %v330_v53  ;;  %v334_v59 = vadd.f32 %v333_v58, %v135_v56  ;;  %v335_v60 = vpop.f32.mrb[11].mxu0  ;;  %503 = vmatprep.subr.bf16.mxu1 %v403_v55 }
 0x12c   :  { %907 = vtanh.f32 %v332_v57  ;;  %v336_v61 = vadd.f32 %v335_v60, %v135_v56  ;;  %504 = vmatpush1.bf16.msra.mxu1 %v402_v52 }
 0x12d   :  { %v898_v62 = vpop.eup %897  ;;  %909 = vtanh.f32 %v334_v59 }
 0x12e   :  { %v900_v63 = vpop.eup %899  ;;  %911 = vtanh.f32 %v336_v61 }
 0x12f   :  { %v902_v0 = vpop.eup %901 }
 0x130   :  { %v904_v1 = vpop.eup %903  ;;  %v339_v3 = vpop.f32.mrb[12].mxu0  ;;  %v404_v4 = vpack.c.bf16 %v902_v0, %v898_v62 }
 0x131   :  { %v340_v5 = vadd.f32 %v339_v3, %v140_v2  ;;  %v341_v6 = vpop.f32.mrb[13].mxu0  ;;  %v405_v8 = vpack.c.bf16 %v904_v1, %v900_v63 }
 0x132   :  { %v342_v10 = vadd.f32 %v341_v6, %v140_v2  ;;  %v343_v11 = vpop.f32.mrb[14].mxu0 }
 0x133   :  { %913 = vtanh.f32 %v340_v5  ;;  %v344_v12 = vadd.f32 %v343_v11, %v145_v9  ;;  %v345_v13 = vpop.f32.mrb[15].mxu0  ;;  %505 = vmatprep.subr.bf16.mxu1 %v405_v8  ;;  %v883_v8 = vld [vmem:[%s1302_s3] sm:$0xff]   ;;  %v886_v11 = vld [vmem:[%s1302_s3 + $0x18] ss:$0 sps:$4 sm:$0xff]  }
 0x134   :  { %915 = vtanh.f32 %v342_v10  ;;  %v346_v14 = vadd.f32 %v345_v13, %v145_v9  ;;  %506 = vmatpush1.bf16.msra.mxu1 %v404_v4  ;;  %v884_v9 = vld [vmem:[%s1302_s3 + $0x8] sm:$0xff]   ;;  %v885_v10 = vld [vmem:[%s1302_s3 + $0x10] sm:$0xff]  }
 0x135   :  { %v906_v15 = vpop.eup %905  ;;  %917 = vtanh.f32 %v344_v12  ;;  %v433_v12 = vpop.permute.xlu1 %432 }
 0x136   :  { %v908_v16 = vpop.eup %907  ;;  %919 = vtanh.f32 %v346_v14 }
 0x137   :  { %v910_v17 = vpop.eup %909 }
 0x138   :  { %v912_v18 = vpop.eup %911  ;;  %v349_v21 = vpop.f32.mrb[16].mxu0  ;;  %v406_v22 = vpack.c.bf16 %v910_v17, %v906_v15 }
 0x139   :  { %v350_v23 = vadd.f32 %v349_v21, %v150_v19  ;;  %v351_v20 = vpop.f32.mrb[17].mxu0  ;;  %v407_v24 = vpack.c.bf16 %v912_v18, %v908_v16  ;;  %v438_v16 = vpop.permute.xlu0 %437 }
 0x13a   :  { %v352_v26 = vadd.f32 %v351_v20, %v150_v19  ;;  %v353_v27 = vpop.f32.mrb[18].mxu0 }
 0x13b   :  { %921 = vtanh.f32 %v350_v23  ;;  %v354_v28 = vadd.f32 %v353_v27, %v155_v25  ;;  %v355_v29 = vpop.f32.mrb[19].mxu0  ;;  %507 = vmatprep.subr.bf16.mxu1 %v407_v24  ;;  %v443_v23 = vpop.permute.xlu1 %442 }
 0x13c   :  { %923 = vtanh.f32 %v352_v26  ;;  %v356_v30 = vadd.f32 %v355_v29, %v155_v25  ;;  %508 = vmatpush1.bf16.msra.mxu1 %v406_v22 }
 0x13d   :  { %v914_v31 = vpop.eup %913  ;;  %925 = vtanh.f32 %v354_v28  ;;  %v448_v26 = vpop.permute.xlu0 %447 }
 0x13e   :  { %v916_v32 = vpop.eup %915  ;;  %927 = vtanh.f32 %v356_v30 }
 0x13f   :  { %v918_v33 = vpop.eup %917 }
 0x140   :  { %v920_v34 = vpop.eup %919  ;;  %v359_v36 = vpop.f32.mrb[20].mxu0  ;;  %v408_v37 = vpack.c.bf16 %v918_v33, %v914_v31 }
 0x141   :  { %v360_v38 = vadd.f32 %v359_v36, %v160_v35  ;;  %v361_v39 = vpop.f32.mrb[21].mxu0  ;;  %v409_v40 = vpack.c.bf16 %v920_v34, %v916_v32  ;;  %v453_v36 = vpop.permute.xlu1 %452 }
 0x142   :  { %v362_v42 = vadd.f32 %v361_v39, %v160_v35  ;;  %v363_v43 = vpop.f32.mrb[22].mxu0 }
 0x143   :  { %929 = vtanh.f32 %v360_v38  ;;  %v364_v44 = vadd.f32 %v363_v43, %v165_v41  ;;  %v365_v45 = vpop.f32.mrb[23].mxu0  ;;  %509 = vmatprep.subr.bf16.mxu1 %v409_v40 }
 0x144   :  { %931 = vtanh.f32 %v362_v42  ;;  %v366_v46 = vadd.f32 %v365_v45, %v165_v41  ;;  %510 = vmatpush1.bf16.msra.mxu1 %v408_v37  ;;  %v458_v42 = vpop.permute.xlu0 %457 }
 0x145   :  { %v922_v47 = vpop.eup %921  ;;  %933 = vtanh.f32 %v364_v44 }
 0x146   :  { %v924_v48 = vpop.eup %923  ;;  %935 = vtanh.f32 %v366_v46 }
 0x147   :  { %v926_v49 = vpop.eup %925 }
 0x148   :  { %v928_v50 = vpop.eup %927  ;;  %v369_v52 = vpop.f32.mrb[24].mxu0  ;;  %v410_v53 = vpack.c.bf16 %v926_v49, %v922_v47 }
 0x149   :  { %v370_v54 = vadd.f32 %v369_v52, %v170_v51  ;;  %v371_v55 = vpop.f32.mrb[25].mxu0  ;;  %v411_v56 = vpack.c.bf16 %v928_v50, %v924_v48  ;;  %v463_v52 = vpop.permute.xlu1 %462 }
 0x14a   :  { %v372_v57 = vadd.f32 %v371_v55, %v170_v51  ;;  %v373_v58 = vpop.f32.mrb[26].mxu0 }
 0x14b   :  { %937 = vtanh.f32 %v370_v54  ;;  %v374_v59 = vpop.f32.mrb[27].mxu0  ;;  %511 = vmatprep.subr.bf16.mxu1 %v411_v56 }
 0x14c   :  { %939 = vtanh.f32 %v372_v57  ;;  %512 = vmatpush1.bf16.msra.mxu1 %v410_v53 }
 0x14d   :  { %v930_v60 = vpop.eup %929 }
 0x14e   :  { %v932_v61 = vpop.eup %931 }
 0x14f   :  { %v934_v62 = vpop.eup %933 }
 0x150   :  { %v936_v63 = vpop.eup %935  ;;  %v412_v0 = vpack.c.bf16 %v934_v62, %v930_v60 }
 0x151   :  { %v413_v1 = vpack.c.bf16 %v936_v63, %v932_v61 }
 0x153   :  { %513 = vmatprep.subr.bf16.mxu1 %v413_v1 }
 0x154   :  { %514 = vmatpush1.bf16.msra.mxu1 %v412_v0 }
 0x155   :  { %v938_v2 = vpop.eup %937 }
 0x156   :  { %v940_v3 = vpop.eup %939  ;;  %v414_v4 = vpack.c.bf16 %v938_v2, %v938_v2 }
 0x157   :  { %v415_v5 = vpack.c.bf16 %v940_v3, %v940_v3 }
 0x158   :  { %v498_v6 = vsel %vm496_vm1, %v414_v4, 0 }
 0x159   :  { %824 = vmatprep.subr.msk.bf16.mxu1 %vm496_vm1, %v415_v5 }
 0x15a   :  { %516 = vmatpush1.bf16.msra.mxu1 %v498_v6 }
 0x15d   :  { %825 = vmatmul.mubr.msk.bf16.vlgmr.msra.gmra.mrb[0].mxu1 %vm483_vm2, %v883_v8 }
 0x15e   :  { %545 = vmatprep.mubr.bf16.mxu1 %v985_v7 }
 0x165   :  { %826 = vmatmul.mubr.msk.bf16.gmra.mrb[4].mxu1 %vm483_vm2, %v884_v9  ;;  %v887_v9 = vld [vmem:[%s1304_s5] sm:$0xff]  }
 0x166   :  { %555 = vmatprep.mubr.bf16.mxu1 %v985_v7 }
 0x16d   :  { %827 = vmatmul.mubr.msk.bf16.gmra.mrb[8].mxu1 %vm483_vm2, %v885_v10  ;;  %v888_v10 = vld [vmem:[%s1304_s5 + $0x8] sm:$0xff]  }
 0x16e   :  { %565 = vmatprep.mubr.bf16.mxu1 %v985_v7 }
 0x175   :  { %828 = vmatmul.mubr.msk.bf16.gmra.mrb[12].mxu1 %vm483_vm2, %v886_v11  ;;  %v607_v11 = vpop.permute.xlu0 %606 }
 0x176   :  { %679 = vmatprep.mubr.bf16.mxu1 %v985_v7 }
 0x230   :  { %v537_v13 = vpop.f32.mrb[0].mxu1 }
 0x231   :  { %v538_v14 = vadd.f32 %v537_v13, %v433_v12  ;;  %v539_v15 = vpop.f32.mrb[1].mxu1 }
 0x232   :  { %v540_v17 = vadd.f32 %v539_v15, %v433_v12  ;;  %v541_v18 = vpop.f32.mrb[2].mxu1  ;;  %v612_v15 = vpop.permute.xlu1 %611 }
 0x233   :  { %941 = vtanh.f32 %v538_v14  ;;  %v542_v19 = vadd.f32 %v541_v18, %v438_v16  ;;  %v543_v21 = vpop.f32.mrb[3].mxu1 }
 0x234   :  { %943 = vtanh.f32 %v540_v17  ;;  %v544_v22 = vadd.f32 %v543_v21, %v438_v16 }
 0x235   :  { %945 = vtanh.f32 %v542_v19 }
 0x236   :  { %947 = vtanh.f32 %v544_v22  ;;  %v617_v22 = vpop.permute.xlu0 %616 }
 0x238   :  { %v547_v20 = vpop.f32.mrb[4].mxu1 }
 0x239   :  { %v548_v24 = vadd.f32 %v547_v20, %v443_v23  ;;  %v549_v25 = vpop.f32.mrb[5].mxu1 }
 0x23a   :  { %v550_v27 = vadd.f32 %v549_v25, %v443_v23  ;;  %v551_v28 = vpop.f32.mrb[6].mxu1  ;;  %v622_v25 = vpop.permute.xlu1 %621 }
 0x23b   :  { %949 = vtanh.f32 %v548_v24  ;;  %v552_v29 = vadd.f32 %v551_v28, %v448_v26  ;;  %v553_v30 = vpop.f32.mrb[7].mxu1 }
 0x23c   :  { %951 = vtanh.f32 %v550_v27  ;;  %v554_v31 = vadd.f32 %v553_v30, %v448_v26 }
 0x23d   :  { %v942_v32 = vpop.eup %941  ;;  %953 = vtanh.f32 %v552_v29 }
 0x23e   :  { %v944_v33 = vpop.eup %943  ;;  %955 = vtanh.f32 %v554_v31 }
 0x23f   :  { %v946_v34 = vpop.eup %945 }
 0x240   :  { %v948_v35 = vpop.eup %947  ;;  %v557_v37 = vpop.f32.mrb[8].mxu1  ;;  %v588_v38 = vpack.c.bf16 %v946_v34, %v942_v32 }
 0x241   :  { %v558_v39 = vadd.f32 %v557_v37, %v453_v36  ;;  %v559_v40 = vpop.f32.mrb[9].mxu1  ;;  %v589_v41 = vpack.c.bf16 %v948_v35, %v944_v33 }
 0x242   :  { %v560_v43 = vadd.f32 %v559_v40, %v453_v36  ;;  %v561_v44 = vpop.f32.mrb[10].mxu1 }
 0x243   :  { %957 = vtanh.f32 %v558_v39  ;;  %v562_v45 = vadd.f32 %v561_v44, %v458_v42  ;;  %v563_v46 = vpop.f32.mrb[11].mxu1  ;;  %647 = vmatprep.subr.bf16.mxu1 %v589_v41 }
 0x244   :  { %959 = vtanh.f32 %v560_v43  ;;  %v564_v47 = vadd.f32 %v563_v46, %v458_v42  ;;  %648 = vmatpush1.bf16.msra.mxu1 %v588_v38  ;;  %v712_v42 = vld [vmem:[%s1306_s7] sm:$0xf]  ;;  %v717_v43 = vpop.permute.xlu0 %716 }
 0x245   :  { %v950_v48 = vpop.eup %949  ;;  %961 = vtanh.f32 %v562_v45 }
 0x246   :  { %v952_v49 = vpop.eup %951  ;;  %963 = vtanh.f32 %v564_v47 }
 0x247   :  { %v954_v50 = vpop.eup %953 }
 0x248   :  { %v956_v51 = vpop.eup %955  ;;  %v567_v53 = vpop.f32.mrb[12].mxu1  ;;  %v590_v54 = vpack.c.bf16 %v954_v50, %v950_v48 }
 0x249   :  { %v568_v55 = vadd.f32 %v567_v53, %v463_v52  ;;  %v569_v56 = vpop.f32.mrb[13].mxu1  ;;  %v591_v57 = vpack.c.bf16 %v956_v51, %v952_v49 }
 0x24a   :  { %v570_v58 = vadd.f32 %v569_v56, %v463_v52  ;;  %v571_v59 = vpop.f32.mrb[14].mxu1 }
 0x24b   :  { %965 = vtanh.f32 %v568_v55  ;;  %v572_v60 = vpop.f32.mrb[15].mxu1  ;;  %649 = vmatprep.subr.bf16.mxu1 %v591_v57 }
 0x24c   :  { %967 = vtanh.f32 %v570_v58  ;;  %650 = vmatpush1.bf16.msra.mxu1 %v590_v54 }
 0x24d   :  { %v958_v61 = vpop.eup %957 }
 0x24e   :  { %v960_v62 = vpop.eup %959 }
 0x24f   :  { %v962_v63 = vpop.eup %961 }
 0x250   :  { %v964_v0 = vpop.eup %963  ;;  %v592_v1 = vpack.c.bf16 %v962_v63, %v958_v61 }
 0x251   :  { %v593_v2 = vpack.c.bf16 %v964_v0, %v960_v62 }
 0x253   :  { %651 = vmatprep.subr.bf16.mxu1 %v593_v2 }
 0x254   :  { %652 = vmatpush1.bf16.msra.mxu1 %v592_v1 }
 0x255   :  { %v966_v3 = vpop.eup %965 }
 0x256   :  { %v968_v4 = vpop.eup %967  ;;  %v594_v5 = vpack.c.bf16 %v966_v3, %v966_v3 }
 0x257   :  { %v595_v6 = vpack.c.bf16 %v968_v4, %v968_v4 }
 0x258   :  { %v642_v8 = vsel %vm496_vm1, %v594_v5, 0 }
 0x259   :  { %831 = vmatprep.subr.msk.bf16.mxu1 %vm496_vm1, %v595_v6 }
 0x25a   :  { %654 = vmatpush1.bf16.msra.mxu1 %v642_v8 }
 0x25d   :  { %832 = vmatmul.mubr.msk.bf16.vlgmr.msra.gmra.mrb[16].mxu1 %vm634_vm3, %v887_v9 }
 0x25e   :  { %689 = vmatprep.mubr.bf16.mxu1 %v985_v7 }
 0x265   :  { %833 = vmatmul.mubr.msk.bf16.gmra.mrb[20].mxu1 %vm634_vm3, %v888_v10 }
 0x266   :  { %755 = vmatprep.mubr.bf16.mxu1 %v985_v7 }
 0x330   :  { %v681_v12 = vpop.f32.mrb[16].mxu1 }
 0x331   :  { %v682_v13 = vadd.f32 %v681_v12, %v607_v11  ;;  %v683_v14 = vpop.f32.mrb[17].mxu1 }
 0x332   :  { %v684_v16 = vadd.f32 %v683_v14, %v607_v11  ;;  %v685_v17 = vpop.f32.mrb[18].mxu1 }
 0x333   :  { %969 = vtanh.f32 %v682_v13  ;;  %v686_v18 = vadd.f32 %v685_v17, %v612_v15  ;;  %v687_v19 = vpop.f32.mrb[19].mxu1 }
 0x334   :  { %971 = vtanh.f32 %v684_v16  ;;  %v688_v21 = vadd.f32 %v687_v19, %v612_v15 }
 0x335   :  { %973 = vtanh.f32 %v686_v18 }
 0x336   :  { %975 = vtanh.f32 %v688_v21 }
 0x338   :  { %v691_v23 = vpop.f32.mrb[20].mxu1 }
 0x339   :  { %v692_v20 = vadd.f32 %v691_v23, %v617_v22  ;;  %v693_v24 = vpop.f32.mrb[21].mxu1 }
 0x33a   :  { %v694_v7 = vadd.f32 %v693_v24, %v617_v22  ;;  %v695_v26 = vpop.f32.mrb[22].mxu1 }
 0x33b   :  { %977 = vtanh.f32 %v692_v20  ;;  %v696_v27 = vadd.f32 %v695_v26, %v622_v25  ;;  %v697_v28 = vpop.f32.mrb[23].mxu1 }
 0x33c   :  { %979 = vtanh.f32 %v694_v7  ;;  %v698_v29 = vadd.f32 %v697_v28, %v622_v25 }
 0x33d   :  { %v970_v30 = vpop.eup %969  ;;  %981 = vtanh.f32 %v696_v27 }
 0x33e   :  { %v972_v31 = vpop.eup %971  ;;  %983 = vtanh.f32 %v698_v29 }
 0x33f   :  { %v974_v32 = vpop.eup %973 }
 0x340   :  { %v976_v33 = vpop.eup %975  ;;  %v708_v34 = vpack.c.bf16 %v974_v32, %v970_v30 }
 0x341   :  { %v709_v35 = vpack.c.bf16 %v976_v33, %v972_v31 }
 0x343   :  { %723 = vmatprep.subr.bf16.mxu1 %v709_v35 }
 0x344   :  { %724 = vmatpush1.bf16.msra.mxu1 %v708_v34 }
 0x345   :  { %v978_v36 = vpop.eup %977 }
 0x346   :  { %v980_v37 = vpop.eup %979 }
 0x347   :  { %v982_v38 = vpop.eup %981 }
 0x348   :  { %v984_v39 = vpop.eup %983  ;;  %v710_v40 = vpack.c.bf16 %v982_v38, %v978_v36 }
 0x349   :  { %v711_v41 = vpack.c.bf16 %v984_v39, %v980_v37 }
 0x34b   :  { %725 = vmatprep.subr.bf16.mxu1 %v711_v41 }
 0x34c   :  { %726 = vmatpush1.bf16.msra.mxu1 %v710_v40 }
 0x34f   :  { %834 = vmatmul.mubr.msk.bf16.vlgmr.msra.gmra.mrb[24].mxu1 %vm719_vm4, %v712_v42 }
 0x422   :  { %v757_v44 = vpop.f32.mrb[24].mxu1 }
 0x423   :  { %v758_v45 = vadd.f32 %v757_v44, %v717_v43  ;;  %v759_v46 = vpop.f32.mrb[25].mxu1 }
 0x424   :  { %v761_v47 = vpop.f32.mrb[26].mxu1 }
 0x425   :  { %796 = vst [vmem:[%s1308_s9] sm:$0xff] %v758_v45  ;;  %v762_v48 = vpop.f32.mrb[27].mxu1 }

</bundles_post_ra>
